<compile_context>
chip_gen: v7x
topology: tpu7x:2x2x1
jax: 0.10.0
libtpu: 0.0.40
codegen_flags: <defaults>
</compile_context>

<pallas_src>
import jax
import jax.numpy as jnp
from jax.experimental import pallas as pl
from jax.experimental.pallas import tpu as pltpu

# ----------------------------- model config -----------------------------
B = 2            # batch (number of molecule graphs)
N = 8            # max_nodes per graph
M = B * N        # folded row count
D = 64           # d_model (small stand-in for 512)
H = 4            # attention heads
DH = D // H      # per-head dim
DFF = 128        # feed-forward hidden dim
N_NODE_TYPES = 20
OUT_SPEC = {"node": 16, "action": 24}   # MultipleOutputHead output_spec
HEAD_PAD = 128   # fused + zero-padded output-head width (lane-dense store)
BPAD = 8         # padded width of the graph-id one-hot factors
DATA_W = 128     # width of the per-call data slab

assert B <= BPAD, "graph-id one-hot factor too narrow for this batch size"
assert D + 2 * BPAD <= DATA_W
assert OUT_SPEC["node"] + OUT_SPEC["action"] <= HEAD_PAD
assert DFF == HEAD_PAD  # w1/b1 share the 128-wide slab with the fused head


def _layer_norm(x, gamma, beta, eps=1e-5):
    # centered two-pass variance (same reduction count, safer numerically)
    mu = jnp.mean(x, axis=-1, keepdims=True)
    xc = x - mu
    var = jnp.mean(xc * xc, axis=-1, keepdims=True)
    return xc * jax.lax.rsqrt(var + eps) * gamma + beta


# ------------------------------- kernel ---------------------------------
def graph_transformer_kernel(
    data_ref,     # (M, 128)      cols [0:64]=x, [64:72]=graph one-hot,
                  #               [72:80]=graph one-hot * key validity
    wqkvb_ref,    # (D+1, 3D)     rows 0:D = fused QKV weight (Q pre-scaled),
                  #               row D = fused QKV bias
    slab128_ref,  # (2D+2, 128)   rows 0:D=w1, D:2D=fused head W (zero-pad),
                  #               row 2D=b1, row 2D+1=fused head bias
    slab64_ref,   # (D+DFF+6, D)  rows 0:D=wo, D:D+DFF=w2, then
                  #               bo, ln1_g, ln1_b, b2, ln2_g, ln2_b
    out_ref,      # (M, HEAD_PAD)
):
    data = data_ref[...]
    x = data[:, 0:D]                                          # (M, D)
    grow = data[:, D:D + BPAD]                                # (M, BPAD)
    gval = data[:, D + BPAD:D + 2 * BPAD]                     # (M, BPAD)

    # Block-diagonal key mask built in-kernel: allowed[i, j] == 1 iff node j
    # is a valid node of the same graph as node i (tiny MXU nt-matmul on the
    # 0/1 one-hot factors -> exact 0/1 values).
    allowed = jax.lax.dot_general(
        grow, gval, dimension_numbers=(((1,), (1,)), ((), ())),
        preferred_element_type=jnp.float32)                   # (M, M)

    # Fused QKV: ONE dense (M,D)@(D,3D) matmul; 1/sqrt(DH) folded into Wq/bq.
    wqkv = wqkvb_ref[0:D, :]                                  # (D, 3D)
    bqkv = wqkvb_ref[D:D + 1, :]                              # (1, 3D)
    qkv = jnp.dot(x, wqkv, preferred_element_type=jnp.float32) + bqkv  # (M, 3D)

    # Per-head views (static lane slices) -> head-major (H, M, DH).
    q = jnp.stack([qkv[:, h * DH:(h + 1) * DH] for h in range(H)], axis=0)
    k = jnp.stack([qkv[:, D + h * DH:D + (h + 1) * DH] for h in range(H)], axis=0)
    v = jnp.stack([qkv[:, 2 * D + h * DH:2 * D + (h + 1) * DH]
                   for h in range(H)], axis=0)

    # Masked softmax attention, batched over heads.
    s = jnp.einsum("hqd,hkd->hqk", q, k,
                   preferred_element_type=jnp.float32)        # (H, M, M)
    allowed3 = jnp.broadcast_to(allowed[None, :, :], s.shape)
    s = jnp.where(allowed3 > 0.5, s, jnp.float32(-1e9))       # select, no mul/add
    m = jnp.max(s, axis=-1, keepdims=True)
    e = jnp.exp(s - m)
    denom = jnp.sum(e, axis=-1, keepdims=True)                # >= 1 always
    p = e * pl.reciprocal(denom, approx=True)                 # EUP slot
    ctx = jnp.einsum("hqk,hkd->hqd", p, v,
                     preferred_element_type=jnp.float32)      # (H, M, DH)

    # Recombine heads along lanes and do ONE K=D output projection.
    ctx_flat = jnp.concatenate([ctx[h] for h in range(H)], axis=-1)     # (M, D)

    wo = slab64_ref[0:D, :]                                   # (D, D)
    w2 = slab64_ref[D:D + DFF, :]                             # (DFF, D)
    vecs = slab64_ref[D + DFF:D + DFF + 6, :]                 # (6, D)
    bo, ln1_g, ln1_b = vecs[0:1], vecs[1:2], vecs[2:3]
    b2, ln2_g, ln2_b = vecs[3:4], vecs[4:5], vecs[5:6]

    attn = jnp.dot(ctx_flat, wo, preferred_element_type=jnp.float32) + bo

    w1 = slab128_ref[0:D, :]                                  # (D, DFF)
    whead = slab128_ref[D:2 * D, :]                           # (D, HEAD_PAD)
    b1 = slab128_ref[2 * D:2 * D + 1, :]                      # (1, DFF)
    bhead = slab128_ref[2 * D + 1:2 * D + 2, :]               # (1, HEAD_PAD)

    # Residual + LN, feed-forward, residual + LN.
    h1 = _layer_norm(x + attn, ln1_g, ln1_b)
    ff = jnp.dot(h1, w1, preferred_element_type=jnp.float32) + b1
    ff = jnp.maximum(ff, 0.0)
    ff = jnp.dot(ff, w2, preferred_element_type=jnp.float32) + b2
    h2 = _layer_norm(h1 + ff, ln2_g, ln2_b)

    # Fused MultipleOutputHead: single lane-dense 128-wide matmul + store.
    out_ref[...] = (
        jnp.dot(h2, whead, preferred_element_type=jnp.float32) + bhead)


# --------------------------- cost estimate -------------------------------
_FLOPS = (
    2 * M * BPAD * M                 # block-diagonal mask matmul
    + 2 * M * D * (3 * D)            # fused QKV projection
    + 2 * H * M * M * DH * 2         # scores + context
    + 2 * M * D * D                  # attention output projection
    + 2 * M * D * DFF * 2            # FFN
    + 2 * M * D * HEAD_PAD           # fused output heads
)
_TRANS = H * M * M + H * M + 4 * M   # exp + reciprocal + rsqrt
_BYTES = 4 * (
    M * DATA_W + (D + 1) * 3 * D + (2 * D + 2) * HEAD_PAD
    + (D + DFF + 6) * D + M * HEAD_PAD
)


# ------------------------------ wrappers ----------------------------------
def _encoder_and_heads(data, wqkvb, slab128, slab64):
    return pl.pallas_call(
        graph_transformer_kernel,
        out_shape=jax.ShapeDtypeStruct((M, HEAD_PAD), jnp.float32),
        in_specs=[pl.BlockSpec(memory_space=pltpu.MemorySpace.VMEM)] * 4,
        out_specs=pl.BlockSpec(memory_space=pltpu.MemorySpace.VMEM),
        cost_estimate=pl.CostEstimate(
            flops=_FLOPS, transcendentals=_TRANS, bytes_accessed=_BYTES),
    )(data, wqkvb, slab128, slab64)


def pack_params(params):
    """Pack per-tensor params into 4 kernel slabs.  Called ONCE at init
    (hoisted out of the per-call jit -- the packing graph otherwise rivals the
    kernel itself at this size)."""
    scale = jnp.float32(1.0 / (DH ** 0.5))

    # (D, 3D) fused QKV weight; head h occupies columns h*DH:(h+1)*DH of each
    # third; 1/sqrt(DH) folded into the Q part; bias appended as last row.
    wqkv = jnp.concatenate(
        [params["wq"] * scale, params["wk"], params["wv"]], axis=1)
    bqkv = jnp.concatenate(
        [params["bq"] * scale, params["bk"], params["bv"]], axis=1)
    wqkvb = jnp.concatenate([wqkv, bqkv], axis=0)                  # (D+1, 3D)

    n_node, n_act = OUT_SPEC["node"], OUT_SPEC["action"]
    w_head = jnp.zeros((D, HEAD_PAD), jnp.float32)
    w_head = w_head.at[:, :n_node].set(params["w_node"])
    w_head = w_head.at[:, n_node:n_node + n_act].set(params["w_action"])
    b_head = jnp.zeros((1, HEAD_PAD), jnp.float32)
    b_head = b_head.at[:, :n_node].set(params["b_node"])
    b_head = b_head.at[:, n_node:n_node + n_act].set(params["b_action"])
    slab128 = jnp.concatenate(
        [params["w1"], w_head, params["b1"], b_head], axis=0)      # (2D+2, 128)

    slab64 = jnp.concatenate(
        [params["wo"], params["w2"], params["bo"],
         params["ln1_g"], params["ln1_b"], params["b2"],
         params["ln2_g"], params["ln2_b"]], axis=0)                # (D+DFF+6, D)

    # static one-hot graph-id factor for the in-kernel block-diagonal mask
    gid = jnp.repeat(jnp.arange(B, dtype=jnp.int32), N)            # (M,)
    grow = (gid[:, None] == jnp.arange(BPAD, dtype=jnp.int32)[None, :]
            ).astype(jnp.float32)                                  # (M, BPAD)

    return {"embedding": params["embedding"], "wqkvb": wqkvb,
            "slab128": slab128, "slab64": slab64, "grow": grow}


@jax.jit
def _forward_core(node_types, node_mask, packed):
    # glue: GraphEncoder node featurization (embedding gather)
    x = jnp.take(packed["embedding"], node_types.reshape(M), axis=0)   # (M, D)
    grow = packed["grow"]                                              # (M, BPAD)
    gval = grow * node_mask.reshape(M, 1).astype(jnp.float32)          # (M, BPAD)
    pad = jnp.zeros((M, DATA_W - D - 2 * BPAD), jnp.float32)
    data = jnp.concatenate([x, grow, gval, pad], axis=1)               # (M, 128)

    flat = _encoder_and_heads(data, packed["wqkvb"], packed["slab128"],
                              packed["slab64"])                        # (M, 128)

    n_node, n_act = OUT_SPEC["node"], OUT_SPEC["action"]
    node = flat[:, :n_node].reshape(B, N, n_node)
    action = flat[:, n_node:n_node + n_act].reshape(B, N, n_act)
    return node, action


def graph_transformer_forward(node_types, node_mask, packed):
    """node_types: [B, N] int32 node-type ids; node_mask: [B, N] {0,1} float.

    Returns a dict like the PyTorch module: per-head [B, N, out] tensors plus
    the input 'graphs' (here the (node_types, node_mask) representation).
    """
    node, action = _forward_core(node_types, node_mask, packed)
    # TODO(synk): dropout (drop_rate) is identity in eval mode and omitted.
    # NOTE: padded (masked) query rows still produce logits (same as the
    # PyTorch module); downstream code is expected to mask them.
    return {"node": node, "action": action, "graphs": (node_types, node_mask)}


# ----------------------- params & pure-JAX reference ----------------------
def make_params(key):
    ks = jax.random.split(key, 10)
    s = 0.02
    return {
        "embedding": s * jax.random.normal(ks[0], (N_NODE_TYPES, D), jnp.float32),
        "wq": s * jax.random.normal(ks[1], (D, D), jnp.float32),
        "bq": jnp.zeros((1, D), jnp.float32),
        "wk": s * jax.random.normal(ks[2], (D, D), jnp.float32),
        "bk": jnp.zeros((1, D), jnp.float32),
        "wv": s * jax.random.normal(ks[3], (D, D), jnp.float32),
        "bv": jnp.zeros((1, D), jnp.float32),
        "wo": s * jax.random.normal(ks[4], (D, D), jnp.float32),
        "bo": jnp.zeros((1, D), jnp.float32),
        "ln1_g": jnp.ones((1, D), jnp.float32),
        "ln1_b": jnp.zeros((1, D), jnp.float32),
        "w1": s * jax.random.normal(ks[5], (D, DFF), jnp.float32),
        "b1": jnp.zeros((1, DFF), jnp.float32),
        "w2": s * jax.random.normal(ks[6], (DFF, D), jnp.float32),
        "b2": jnp.zeros((1, D), jnp.float32),
        "ln2_g": jnp.ones((1, D), jnp.float32),
        "ln2_b": jnp.zeros((1, D), jnp.float32),
        "w_node": s * jax.random.normal(ks[7], (D, OUT_SPEC["node"]), jnp.float32),
        "b_node": jnp.zeros((1, OUT_SPEC["node"]), jnp.float32),
        "w_action": s * jax.random.normal(ks[8], (D, OUT_SPEC["action"]), jnp.float32),
        "b_action": jnp.zeros((1, OUT_SPEC["action"]), jnp.float32),
    }


def _reference_forward(node_types, node_mask, params):
    """Plain-JAX reference of the same forward pass (per-graph attention)."""
    x = jnp.take(params["embedding"], node_types, axis=0)            # (B, N, D)
    q = x @ params["wq"] + params["bq"]
    k = x @ params["wk"] + params["bk"]
    v = x @ params["wv"] + params["bv"]
    qh = q.reshape(B, N, H, DH).transpose(0, 2, 1, 3)
    kh = k.reshape(B, N, H, DH).transpose(0, 2, 1, 3)
    vh = v.reshape(B, N, H, DH).transpose(0, 2, 1, 3)
    s = jnp.einsum("bhqd,bhkd->bhqk", qh, kh) / (DH ** 0.5)
    s = s + jnp.where(node_mask[:, None, None, :] > 0.5, 0.0, -1e9)
    p = jax.nn.softmax(s, axis=-1)
    ctx = jnp.einsum("bhqk,bhkd->bhqd", p, vh)
    attn = ctx.transpose(0, 2, 1, 3).reshape(B, N, D) @ params["wo"] + params["bo"]
    h1 = _layer_norm(x + attn, params["ln1_g"], params["ln1_b"])
    ff = jnp.maximum(h1 @ params["w1"] + params["b1"], 0.0) @ params["w2"] + params["b2"]
    h2 = _layer_norm(h1 + ff, params["ln2_g"], params["ln2_b"])
    node = h2 @ params["w_node"] + params["b_node"]
    action = h2 @ params["w_action"] + params["b_action"]
    return node, action


if __name__ == "__main__":
    key = jax.random.PRNGKey(0)
    pkey, tkey = jax.random.split(key)
    params = make_params(pkey)
    packed = pack_params(params)   # hoisted: packing happens once at init

    # synthetic "hypergraph batch": node-type ids + per-graph node counts
    node_types = jax.random.randint(tkey, (B, N), 0, N_NODE_TYPES, dtype=jnp.int32)
    node_counts = jnp.array([N, 5], dtype=jnp.int32)
    node_mask = (jnp.arange(N)[None, :] < node_counts[:, None]).astype(jnp.float32)

    out = graph_transformer_forward(node_types, node_mask, packed)
    jax.block_until_ready(out["node"])
    jax.block_until_ready(out["action"])

    assert out["node"].shape == (B, N, OUT_SPEC["node"])
    assert out["action"].shape == (B, N, OUT_SPEC["action"])
    assert bool(jnp.all(jnp.isfinite(out["node"])))
    assert bool(jnp.all(jnp.isfinite(out["action"])))

    # numerical check against plain-JAX reference (loose tol: approx recip / MXU)
    ref_node, ref_action = _reference_forward(node_types, node_mask, params)
    assert bool(jnp.allclose(out["node"], ref_node, atol=2e-2, rtol=2e-2)), (
        "node mismatch, max abs err = %e"
        % float(jnp.max(jnp.abs(out["node"] - ref_node))))
    assert bool(jnp.allclose(out["action"], ref_action, atol=2e-2, rtol=2e-2)), (
        "action mismatch, max abs err = %e"
        % float(jnp.max(jnp.abs(out["action"] - ref_action))))

    print("KERNEL_OK")
</pallas_src>

<mosaic_0001>
module attributes {stable_mosaic.version = 11 : i64} {
  func.func @graph_transformer_kernel(%arg0: memref<16x128xf32, #tpu.memory_space<vmem>>, %arg1: memref<65x192xf32, #tpu.memory_space<vmem>>, %arg2: memref<130x128xf32, #tpu.memory_space<vmem>>, %arg3: memref<198x64xf32, #tpu.memory_space<vmem>>, %arg4: memref<16x128xf32, #tpu.memory_space<vmem>>) attributes {dimension_semantics = [], scalar_prefetch = 0 : i64, scratch_operands = 0 : i64, tpu.core_type = #tpu.core_type<tc>} {
    %c0 = arith.constant 0 : index
    %c0_0 = arith.constant 0 : index
    %0 = vector.load %arg0[%c0, %c0_0] : memref<16x128xf32, #tpu.memory_space<vmem>>, vector<16x128xf32>
    %1 = vector.extract_strided_slice %0 {offsets = [0, 0], sizes = [16, 64], strides = [1, 1]} : vector<16x128xf32> to vector<16x64xf32>
    %2 = vector.extract_strided_slice %0 {offsets = [0, 64], sizes = [16, 8], strides = [1, 1]} : vector<16x128xf32> to vector<16x8xf32>
    %3 = vector.extract_strided_slice %0 {offsets = [0, 72], sizes = [16, 8], strides = [1, 1]} : vector<16x128xf32> to vector<16x8xf32>
    %cst = arith.constant dense<0.000000e+00> : vector<16x16xf32>
    %4 = tpu.matmul %2, %3, %cst {dimension_numbers = #tpu.dot_dimension_numbers<[1], [1], [0], [0], [0, 0, 1, 0], [], []>} : vector<16x8xf32>, vector<16x8xf32>, vector<16x16xf32> -> vector<16x16xf32>
    %c0_1 = arith.constant 0 : index
    %c0_2 = arith.constant 0 : index
    %5 = vector.load %arg1[%c0_1, %c0_2] : memref<65x192xf32, #tpu.memory_space<vmem>>, vector<64x192xf32>
    %c64 = arith.constant 64 : index
    %c0_3 = arith.constant 0 : index
    %6 = vector.load %arg1[%c64, %c0_3] : memref<65x192xf32, #tpu.memory_space<vmem>>, vector<1x192xf32>
    %cst_4 = arith.constant dense<0.000000e+00> : vector<16x192xf32>
    %7 = tpu.matmul %1, %5, %cst_4 {dimension_numbers = #tpu.dot_dimension_numbers<[1], [0], [0], [1], [0, 0, 1, 1], [], []>} : vector<16x64xf32>, vector<64x192xf32>, vector<16x192xf32> -> vector<16x192xf32>
    %8 = vector.broadcast %6 : vector<1x192xf32> to vector<16x192xf32>
    %9 = arith.addf %7, %8 : vector<16x192xf32>
    %10 = vector.extract_strided_slice %9 {offsets = [0, 0], sizes = [16, 16], strides = [1, 1]} : vector<16x192xf32> to vector<16x16xf32>
    %11 = vector.extract_strided_slice %9 {offsets = [0, 16], sizes = [16, 16], strides = [1, 1]} : vector<16x192xf32> to vector<16x16xf32>
    %12 = vector.extract_strided_slice %9 {offsets = [0, 32], sizes = [16, 16], strides = [1, 1]} : vector<16x192xf32> to vector<16x16xf32>
    %13 = vector.extract_strided_slice %9 {offsets = [0, 48], sizes = [16, 16], strides = [1, 1]} : vector<16x192xf32> to vector<16x16xf32>
    %14 = vector.shape_cast %10 : vector<16x16xf32> to vector<1x16x16xf32>
    %15 = vector.shape_cast %11 : vector<16x16xf32> to vector<1x16x16xf32>
    %16 = vector.shape_cast %12 : vector<16x16xf32> to vector<1x16x16xf32>
    %17 = vector.shape_cast %13 : vector<16x16xf32> to vector<1x16x16xf32>
    %18 = tpu.concatenate %14, %15, %16, %17 in 0 : vector<1x16x16xf32>, vector<1x16x16xf32>, vector<1x16x16xf32>, vector<1x16x16xf32> -> vector<4x16x16xf32>
    %19 = vector.extract_strided_slice %9 {offsets = [0, 64], sizes = [16, 16], strides = [1, 1]} : vector<16x192xf32> to vector<16x16xf32>
    %20 = vector.extract_strided_slice %9 {offsets = [0, 80], sizes = [16, 16], strides = [1, 1]} : vector<16x192xf32> to vector<16x16xf32>
    %21 = vector.extract_strided_slice %9 {offsets = [0, 96], sizes = [16, 16], strides = [1, 1]} : vector<16x192xf32> to vector<16x16xf32>
    %22 = vector.extract_strided_slice %9 {offsets = [0, 112], sizes = [16, 16], strides = [1, 1]} : vector<16x192xf32> to vector<16x16xf32>
    %23 = vector.shape_cast %19 : vector<16x16xf32> to vector<1x16x16xf32>
    %24 = vector.shape_cast %20 : vector<16x16xf32> to vector<1x16x16xf32>
    %25 = vector.shape_cast %21 : vector<16x16xf32> to vector<1x16x16xf32>
    %26 = vector.shape_cast %22 : vector<16x16xf32> to vector<1x16x16xf32>
    %27 = tpu.concatenate %23, %24, %25, %26 in 0 : vector<1x16x16xf32>, vector<1x16x16xf32>, vector<1x16x16xf32>, vector<1x16x16xf32> -> vector<4x16x16xf32>
    %28 = vector.extract_strided_slice %9 {offsets = [0, 128], sizes = [16, 16], strides = [1, 1]} : vector<16x192xf32> to vector<16x16xf32>
    %29 = vector.extract_strided_slice %9 {offsets = [0, 144], sizes = [16, 16], strides = [1, 1]} : vector<16x192xf32> to vector<16x16xf32>
    %30 = vector.extract_strided_slice %9 {offsets = [0, 160], sizes = [16, 16], strides = [1, 1]} : vector<16x192xf32> to vector<16x16xf32>
    %31 = vector.extract_strided_slice %9 {offsets = [0, 176], sizes = [16, 16], strides = [1, 1]} : vector<16x192xf32> to vector<16x16xf32>
    %32 = vector.shape_cast %28 : vector<16x16xf32> to vector<1x16x16xf32>
    %33 = vector.shape_cast %29 : vector<16x16xf32> to vector<1x16x16xf32>
    %34 = vector.shape_cast %30 : vector<16x16xf32> to vector<1x16x16xf32>
    %35 = vector.shape_cast %31 : vector<16x16xf32> to vector<1x16x16xf32>
    %36 = tpu.concatenate %32, %33, %34, %35 in 0 : vector<1x16x16xf32>, vector<1x16x16xf32>, vector<1x16x16xf32>, vector<1x16x16xf32> -> vector<4x16x16xf32>
    "tpu.trace_start"() <{level = 10 : i32, message = "hqd,hkd->hqk"}> : () -> ()
    %cst_5 = arith.constant dense<0.000000e+00> : vector<4x16x16xf32>
    %37 = tpu.matmul %18, %27, %cst_5 {dimension_numbers = #tpu.dot_dimension_numbers<[2], [2], [1], [1], [0, 0, 0, 1, 1, 1], [0], [0]>} : vector<4x16x16xf32>, vector<4x16x16xf32>, vector<4x16x16xf32> -> vector<4x16x16xf32>
    "tpu.trace_stop"() : () -> ()
    %38 = vector.shape_cast %4 : vector<16x16xf32> to vector<1x16x16xf32>
    %39 = vector.shape_cast %38 : vector<1x16x16xf32> to vector<1x16x16xf32>
    %40 = vector.broadcast %39 : vector<1x16x16xf32> to vector<4x16x16xf32>
    %cst_6 = arith.constant 5.000000e-01 : f32
    %41 = vector.broadcast %cst_6 : f32 to vector<4x16x16xf32>
    %42 = arith.cmpf ogt, %40, %41 : vector<4x16x16xf32>
    %cst_7 = arith.constant -1.000000e+09 : f32
    %43 = vector.broadcast %cst_7 : f32 to vector<4x16x16xf32>
    %44 = arith.select %42, %37, %43 : vector<4x16x16xi1>, vector<4x16x16xf32>
    %cst_8 = arith.constant dense<0xFF800000> : vector<4x16xf32>
    %45 = vector.multi_reduction <maximumf>, %44, %cst_8 [2] : vector<4x16x16xf32> to vector<4x16xf32>
    %46 = vector.shape_cast %45 : vector<4x16xf32> to vector<4x16x1xf32>
    %47 = vector.broadcast %46 : vector<4x16x1xf32> to vector<4x16x16xf32>
    %48 = arith.subf %44, %47 : vector<4x16x16xf32>
    %49 = math.exp %48 : vector<4x16x16xf32>
    %cst_9 = arith.constant dense<0.000000e+00> : vector<4x16xf32>
    %50 = vector.multi_reduction <add>, %49, %cst_9 [2] : vector<4x16x16xf32> to vector<4x16xf32>
    %51 = vector.shape_cast %50 : vector<4x16xf32> to vector<4x16x1xf32>
    %52 = tpu.reciprocal %51 {approx = true} : vector<4x16x1xf32> -> vector<4x16x1xf32>
    %53 = vector.broadcast %52 : vector<4x16x1xf32> to vector<4x16x16xf32>
    %54 = arith.mulf %49, %53 : vector<4x16x16xf32>
    "tpu.trace_start"() <{level = 10 : i32, message = "hqk,hkd->hqd"}> : () -> ()
    %cst_10 = arith.constant dense<0.000000e+00> : vector<4x16x16xf32>
    %55 = tpu.matmul %54, %36, %cst_10 {dimension_numbers = #tpu.dot_dimension_numbers<[2], [1], [1], [2], [0, 0, 0, 1, 1, 2], [0], [0]>} : vector<4x16x16xf32>, vector<4x16x16xf32>, vector<4x16x16xf32> -> vector<4x16x16xf32>
    "tpu.trace_stop"() : () -> ()
    %56 = vector.extract_strided_slice %55 {offsets = [0, 0, 0], sizes = [1, 16, 16], strides = [1, 1, 1]} : vector<4x16x16xf32> to vector<1x16x16xf32>
    %57 = vector.shape_cast %56 : vector<1x16x16xf32> to vector<16x16xf32>
    %58 = vector.extract_strided_slice %55 {offsets = [1, 0, 0], sizes = [1, 16, 16], strides = [1, 1, 1]} : vector<4x16x16xf32> to vector<1x16x16xf32>
    %59 = vector.shape_cast %58 : vector<1x16x16xf32> to vector<16x16xf32>
    %60 = vector.extract_strided_slice %55 {offsets = [2, 0, 0], sizes = [1, 16, 16], strides = [1, 1, 1]} : vector<4x16x16xf32> to vector<1x16x16xf32>
    %61 = vector.shape_cast %60 : vector<1x16x16xf32> to vector<16x16xf32>
    %62 = vector.extract_strided_slice %55 {offsets = [3, 0, 0], sizes = [1, 16, 16], strides = [1, 1, 1]} : vector<4x16x16xf32> to vector<1x16x16xf32>
    %63 = vector.shape_cast %62 : vector<1x16x16xf32> to vector<16x16xf32>
    %64 = tpu.concatenate %57, %59, %61, %63 in 1 : vector<16x16xf32>, vector<16x16xf32>, vector<16x16xf32>, vector<16x16xf32> -> vector<16x64xf32>
    %c0_11 = arith.constant 0 : index
    %c0_12 = arith.constant 0 : index
    %65 = vector.load %arg3[%c0_11, %c0_12] : memref<198x64xf32, #tpu.memory_space<vmem>>, vector<64x64xf32>
    %c64_13 = arith.constant 64 : index
    %c0_14 = arith.constant 0 : index
    %66 = vector.load %arg3[%c64_13, %c0_14] : memref<198x64xf32, #tpu.memory_space<vmem>>, vector<128x64xf32>
    %c192 = arith.constant 192 : index
    %c0_15 = arith.constant 0 : index
    %67 = vector.load %arg3[%c192, %c0_15] : memref<198x64xf32, #tpu.memory_space<vmem>>, vector<6x64xf32>
    %68 = vector.extract_strided_slice %67 {offsets = [0, 0], sizes = [1, 64], strides = [1, 1]} : vector<6x64xf32> to vector<1x64xf32>
    %69 = vector.extract_strided_slice %67 {offsets = [1, 0], sizes = [1, 64], strides = [1, 1]} : vector<6x64xf32> to vector<1x64xf32>
    %70 = vector.extract_strided_slice %67 {offsets = [2, 0], sizes = [1, 64], strides = [1, 1]} : vector<6x64xf32> to vector<1x64xf32>
    %71 = vector.extract_strided_slice %67 {offsets = [3, 0], sizes = [1, 64], strides = [1, 1]} : vector<6x64xf32> to vector<1x64xf32>
    %72 = vector.extract_strided_slice %67 {offsets = [4, 0], sizes = [1, 64], strides = [1, 1]} : vector<6x64xf32> to vector<1x64xf32>
    %73 = vector.extract_strided_slice %67 {offsets = [5, 0], sizes = [1, 64], strides = [1, 1]} : vector<6x64xf32> to vector<1x64xf32>
    %cst_16 = arith.constant dense<0.000000e+00> : vector<16x64xf32>
    %74 = tpu.matmul %64, %65, %cst_16 {dimension_numbers = #tpu.dot_dimension_numbers<[1], [0], [0], [1], [0, 0, 1, 1], [], []>} : vector<16x64xf32>, vector<64x64xf32>, vector<16x64xf32> -> vector<16x64xf32>
    %75 = vector.broadcast %68 : vector<1x64xf32> to vector<16x64xf32>
    %76 = arith.addf %74, %75 : vector<16x64xf32>
    %c0_17 = arith.constant 0 : index
    %c0_18 = arith.constant 0 : index
    %77 = vector.load %arg2[%c0_17, %c0_18] : memref<130x128xf32, #tpu.memory_space<vmem>>, vector<64x128xf32>
    %c64_19 = arith.constant 64 : index
    %c0_20 = arith.constant 0 : index
    %78 = vector.load %arg2[%c64_19, %c0_20] : memref<130x128xf32, #tpu.memory_space<vmem>>, vector<64x128xf32>
    %c128 = arith.constant 128 : index
    %c0_21 = arith.constant 0 : index
    %79 = vector.load %arg2[%c128, %c0_21] : memref<130x128xf32, #tpu.memory_space<vmem>>, vector<1x128xf32>
    %c129 = arith.constant 129 : index
    %c0_22 = arith.constant 0 : index
    %80 = vector.load %arg2[%c129, %c0_22] : memref<130x128xf32, #tpu.memory_space<vmem>>, vector<1x128xf32>
    %81 = arith.addf %1, %76 : vector<16x64xf32>
    %cst_23 = arith.constant dense<0.000000e+00> : vector<16xf32>
    %82 = vector.multi_reduction <add>, %81, %cst_23 [1] : vector<16x64xf32> to vector<16xf32>
    %83 = vector.shape_cast %82 : vector<16xf32> to vector<16x1xf32>
    %cst_24 = arith.constant 6.400000e+01 : f32
    %84 = vector.broadcast %cst_24 : f32 to vector<16x1xf32>
    %85 = arith.divf %83, %84 : vector<16x1xf32>
    %86 = vector.broadcast %85 : vector<16x1xf32> to vector<16x64xf32>
    %87 = arith.subf %81, %86 : vector<16x64xf32>
    %88 = arith.mulf %87, %87 : vector<16x64xf32>
    %cst_25 = arith.constant dense<0.000000e+00> : vector<16xf32>
    %89 = vector.multi_reduction <add>, %88, %cst_25 [1] : vector<16x64xf32> to vector<16xf32>
    %90 = vector.shape_cast %89 : vector<16xf32> to vector<16x1xf32>
    %cst_26 = arith.constant 6.400000e+01 : f32
    %91 = vector.broadcast %cst_26 : f32 to vector<16x1xf32>
    %92 = arith.divf %90, %91 : vector<16x1xf32>
    %cst_27 = arith.constant 9.99999974E-6 : f32
    %93 = vector.broadcast %cst_27 : f32 to vector<16x1xf32>
    %94 = arith.addf %92, %93 : vector<16x1xf32>
    %95 = math.rsqrt %94 : vector<16x1xf32>
    %96 = vector.broadcast %95 : vector<16x1xf32> to vector<16x64xf32>
    %97 = arith.mulf %87, %96 : vector<16x64xf32>
    %98 = vector.broadcast %69 : vector<1x64xf32> to vector<16x64xf32>
    %99 = arith.mulf %97, %98 : vector<16x64xf32>
    %100 = vector.broadcast %70 : vector<1x64xf32> to vector<16x64xf32>
    %101 = arith.addf %99, %100 : vector<16x64xf32>
    %cst_28 = arith.constant dense<0.000000e+00> : vector<16x128xf32>
    %102 = tpu.matmul %101, %77, %cst_28 {dimension_numbers = #tpu.dot_dimension_numbers<[1], [0], [0], [1], [0, 0, 1, 1], [], []>} : vector<16x64xf32>, vector<64x128xf32>, vector<16x128xf32> -> vector<16x128xf32>
    %103 = vector.broadcast %79 : vector<1x128xf32> to vector<16x128xf32>
    %104 = arith.addf %102, %103 : vector<16x128xf32>
    %cst_29 = arith.constant 0.000000e+00 : f32
    %105 = vector.broadcast %cst_29 : f32 to vector<16x128xf32>
    %106 = arith.maximumf %104, %105 : vector<16x128xf32>
    %cst_30 = arith.constant dense<0.000000e+00> : vector<16x64xf32>
    %107 = tpu.matmul %106, %66, %cst_30 {dimension_numbers = #tpu.dot_dimension_numbers<[1], [0], [0], [1], [0, 0, 1, 1], [], []>} : vector<16x128xf32>, vector<128x64xf32>, vector<16x64xf32> -> vector<16x64xf32>
    %108 = vector.broadcast %71 : vector<1x64xf32> to vector<16x64xf32>
    %109 = arith.addf %107, %108 : vector<16x64xf32>
    %110 = arith.addf %101, %109 : vector<16x64xf32>
    %cst_31 = arith.constant dense<0.000000e+00> : vector<16xf32>
    %111 = vector.multi_reduction <add>, %110, %cst_31 [1] : vector<16x64xf32> to vector<16xf32>
    %112 = vector.shape_cast %111 : vector<16xf32> to vector<16x1xf32>
    %cst_32 = arith.constant 6.400000e+01 : f32
    %113 = vector.broadcast %cst_32 : f32 to vector<16x1xf32>
    %114 = arith.divf %112, %113 : vector<16x1xf32>
    %115 = vector.broadcast %114 : vector<16x1xf32> to vector<16x64xf32>
    %116 = arith.subf %110, %115 : vector<16x64xf32>
    %117 = arith.mulf %116, %116 : vector<16x64xf32>
    %cst_33 = arith.constant dense<0.000000e+00> : vector<16xf32>
    %118 = vector.multi_reduction <add>, %117, %cst_33 [1] : vector<16x64xf32> to vector<16xf32>
    %119 = vector.shape_cast %118 : vector<16xf32> to vector<16x1xf32>
    %cst_34 = arith.constant 6.400000e+01 : f32
    %120 = vector.broadcast %cst_34 : f32 to vector<16x1xf32>
    %121 = arith.divf %119, %120 : vector<16x1xf32>
    %cst_35 = arith.constant 9.99999974E-6 : f32
    %122 = vector.broadcast %cst_35 : f32 to vector<16x1xf32>
    %123 = arith.addf %121, %122 : vector<16x1xf32>
    %124 = math.rsqrt %123 : vector<16x1xf32>
    %125 = vector.broadcast %124 : vector<16x1xf32> to vector<16x64xf32>
    %126 = arith.mulf %116, %125 : vector<16x64xf32>
    %127 = vector.broadcast %72 : vector<1x64xf32> to vector<16x64xf32>
    %128 = arith.mulf %126, %127 : vector<16x64xf32>
    %129 = vector.broadcast %73 : vector<1x64xf32> to vector<16x64xf32>
    %130 = arith.addf %128, %129 : vector<16x64xf32>
    %cst_36 = arith.constant dense<0.000000e+00> : vector<16x128xf32>
    %131 = tpu.matmul %130, %78, %cst_36 {dimension_numbers = #tpu.dot_dimension_numbers<[1], [0], [0], [1], [0, 0, 1, 1], [], []>} : vector<16x64xf32>, vector<64x128xf32>, vector<16x128xf32> -> vector<16x128xf32>
    %132 = vector.broadcast %80 : vector<1x128xf32> to vector<16x128xf32>
    %133 = arith.addf %131, %132 : vector<16x128xf32>
    %c0_37 = arith.constant 0 : index
    %c0_38 = arith.constant 0 : index
    %134 = vector.load %arg4[%c0_37, %c0_38] : memref<16x128xf32, #tpu.memory_space<vmem>>, vector<16x128xf32>
    tpu.vector_store %arg4[%c0_37, %c0_38], %133 {strides = array<i32>} : memref<16x128xf32, #tpu.memory_space<vmem>>, vector<16x128xf32>,
    return
  }
}

</mosaic_0001>

<bundles_post_ra>
// kernel: mul.5
= control target key start
LH: loop header
LB: loop body
LE: loop exit
PB: predicated region body
PF: predicated region fallthrough
CT: control target
= control target key end

     0   :  { %2 = vsyncpa [#allocation1], 0  ;;  %s58_s6 = smov [#allocation0]   ;;  %s85_s0 = inlined_call_operand.hbm [shape: f32[2,8], index: 0, kind: input, shape index: {}]   ;;  %s86_s1 = inlined_call_operand.vmem [shape: f32[16], index: 1, kind: output, shape index: {}]  }
   0x1   :  { %s7_s7 = sshll.u32 %s58_s6, 4  ;;  %s34_s10 = scalar_lea.hbm %s85_s0, 32  ;;  %s8_s7 = int_to_ptr.vmem [resolvable:$true] %s7_s7 }
   0x2   :  { %p35_p0 = scmp.ne.s32.totalorder %s85_s0, %s34_s10  ;;  %p38_p1 = scmp.lt.u32.totalorder %s34_s10, %s85_s0 }
   0x4   :  { %p40_p2 = pnand %p38_p1, %p35_p0 }
   0x6   :  { %43 = shalt.err (!%p40_p2)
}
   0x7   :  { %s44_s15 = scalar_lea.vmem %s8_s7, 32  ;;  %p49_p4 = scmp.lt.s32.totalorder %s8_s7, %s8_s7 }
   0x8   :  { %p45_p3 = scmp.ne.s32.totalorder %s8_s7, %s44_s15  ;;  %p50_p5 = scmp.lt.s32.totalorder %s44_s15, %s44_s15 }
   0xa   :  { %p51_p6 = por %p50_p5, %p49_p4 }
   0xc   :  { %p52_p7 = pnand %p51_p6, %p45_p3 }
   0xe   :  { %55 = shalt.err (!%p52_p7)
}
   0xf   :  { %10 = dma.hbm_to_vmem [thread:$0]  %s85_s0, 32, %s8_s7, [#allocation1]  }
  0x10   :  { %56 = dma.done.wait [#allocation1], 32  }
  0x11   :  { %57 = vsyncadd [#allocation1], 4294967264  ;;  %v14_v0 = vld [vmem:[#allocation0] sm:$0x3]  ;;  %vm17_vm0 = vcmask 64512   ;;  %s59_s0 = smov 8  }
  0x12   :  { %15 = vst [vmem:[#allocation3] sm:$0x3] %v14_v0  ;;  %vm23_vm1 = vcmask 130112  }
  0x19   :  { %v16_v1 = vld [vmem:[#allocation3] sm:$0x1]   ;;  %v20_v2 = vld [vmem:[#allocation3 + $0x1] sm:$0x1]  }
  0x1a   :  { %21 = vrot.lane.b32.xlu0 %v20_v2, %s59_s0  ;;  %18 = vst.msk [vmem:[#allocation2] sm:$0x1] %vm17_vm0, %v16_v1  }
  0x8c   :  { %v22_v3 = vpop.permute.xlu0 %21  }
  0x8d   :  { %24 = vst.msk [vmem:[#allocation2] sm:$0x1] %vm23_vm1, %v22_v3  }
  0x94   :  { %v28_v4 = vld [vmem:[#allocation2] sm:$0x1] }
  0x95   :  { %30 = vst [vmem:[%s86_s1] sm:$0x1] %v28_v4 }
  0x96   :  { %31 = vsyncpa [#allocation1], 1 }

// kernel: _forward_core.1
= control target key start
LH: loop header
LB: loop body
LE: loop exit
PB: predicated region body
PF: predicated region fallthrough
CT: control target
= control target key end

     0   :  { %s2036_s19 = smov 64   ;;  %s2037_s20 = smov 56   ;;  %vm29_vm0 = vcmask 64512   ;;  %v2038_v23 = vmov 0.0   ;;  %vm142_vm2 = vcmask 523264   ;;  %v132_v36 = vlaneseq  ;;  %s2434_s0 = inlined_call_operand.vmem [shape: f32[16,128], index: 0, kind: input, shape index: {}]   ;;  %s2435_s1 = inlined_call_operand.vmem [shape: f32[65,192], index: 1, kind: input, shape index: {}]   ;;  %s2436_s3 = inlined_call_operand.vmem [shape: f32[198,64], index: 3, kind: input, shape index: {}]   ;;  %s2437_s2 = inlined_call_operand.vmem [shape: f32[130,128], index: 2, kind: input, shape index: {}]   ;;  %s2438_s4 = inlined_call_operand.vmem [shape: f32[16,128], index: 4, kind: output, shape index: {}]  }
   0x1   :  { %v2073_v0 = vld [vmem:[%s2434_s0] sm:$0xff]  ;;  %v2078_v1 = vld [vmem:[%s2434_s0 + $0x8] sm:$0xff]  ;;  %v116_v5 = vld [vmem:[%s2435_s1 + $0x18] sm:$0xff]  ;;  %vm262_vm3 = vcmask 130048   ;;  %s2039_s28 = smov 112   ;;  %s2041_s29 = smov 80  }
   0x2   :  { %v1956_v2 = vpack.i.bf16 %v2078_v1, %v2073_v0  ;;  %23 = vrot.lane.b32.xlu1 %v2078_v1, %s2036_s19  ;;  %v114_v4 = vld [vmem:[%s2435_s1 + $0x8] sm:$0xff]  ;;  %vm1806_vm1 = vmpackc.low %vm29_vm0, %vm29_vm0  ;;  %v113_v11 = vld [vmem:[%s2435_s1] sm:$0xff]  ;;  %v2146_v37 = vshrl.u32 %v132_v36, 7  ;;  %s2043_s21 = smov 32   ;;  %s2044_s22 = smov 48   ;;  %vm1055_vm7 = vcmask 261120  }
   0x3   :  { %v1811_v9 = vpack.c.bf16 %v116_v5, %v114_v4  ;;  %v115_v12 = vld [vmem:[%s2435_s1 + $0x10] sm:$0xff]  ;;  %v118_v13 = vld [vmem:[%s2435_s1 + $0x28] sm:$0xff]  ;;  %v120_v14 = vld [vmem:[%s2435_s1 + $0x38] sm:$0xff]  ;;  %vm1058_vm8 = vcmask 392192  }
   0x4   :  { %1957 = vrot.lane.b32.xlu0 %v1956_v2, %s2037_s20  ;;  %v1813_v16 = vpack.c.bf16 %v115_v12, %v113_v11  ;;  %v1815_v17 = vpack.c.bf16 %v120_v14, %v118_v13  ;;  %v117_v18 = vld [vmem:[%s2435_s1 + $0x20] sm:$0xff]  ;;  %v119_v19 = vld [vmem:[%s2435_s1 + $0x30] sm:$0xff]  ;;  %v122_v20 = vld [vmem:[%s2435_s1 + $0x48] sm:$0xff]  ;;  %v134_v38 = vsub.s32 0, %v2146_v37  ;;  %v138_v40 = vsub.s32 1, %v2146_v37  ;;  %s2042_s20 = smov 16  }
   0x5   :  { %v124_v21 = vld [vmem:[%s2435_s1 + $0x58] sm:$0xff]  ;;  %v1817_v22 = vpack.c.bf16 %v119_v19, %v117_v18  ;;  %v121_v25 = vld [vmem:[%s2435_s1 + $0x40] sm:$0xff]  ;;  %v123_v26 = vld [vmem:[%s2435_s1 + $0x50] sm:$0xff] }
   0x6   :  { %v1819_v24 = vpack.c.bf16 %v124_v21, %v122_v20  ;;  %v126_v27 = vld [vmem:[%s2435_s1 + $0x68] sm:$0xff]  ;;  %v128_v28 = vld [vmem:[%s2435_s1 + $0x78] sm:$0xff]  ;;  %v1821_v29 = vpack.c.bf16 %v123_v26, %v121_v25  ;;  %v125_v31 = vld [vmem:[%s2435_s1 + $0x60] sm:$0xff] }
   0x7   :  { %v1823_v30 = vpack.c.bf16 %v128_v28, %v126_v27  ;;  %v127_v32 = vld [vmem:[%s2435_s1 + $0x70] sm:$0xff]  ;;  %v1531_v39 = vld [vmem:[%s2435_s1 + $0x80] ss:$8 sm:$0x3]  ;;  %s2040_s1 = smov 96   ;;  %vm2172_vm4 = vmpackc.low %vm262_vm3, %vm262_vm3 }
   0x8   :  { %21 = vrot.lane.b32.xlu0 %v2073_v0, %s2036_s19  ;;  %v1825_v33 = vpack.c.bf16 %v127_v32, %v125_v31  ;;  %v135_v41 = vrot.slane %v1531_v39, %v134_v38  ;;  %v139_v42 = vrot.slane %v1531_v39, %v138_v40 }
  0x74   :  { %v24_v15 = vpop.permute.xlu1 %23 }
  0x76   :  { %v1958_v3 = vpop.permute.xlu0 %1957 }
  0x77   :  { %v1960_v6 = vunpack.i.h.bf16 %v1958_v3  ;;  %v1959_v7 = vunpack.i.l.bf16 %v1958_v3 }
  0x79   :  { %v1805_v8 = vpack.c.bf16 %v1960_v6, %v1959_v7 }
  0x7a   :  { %v22_v10 = vpop.permute.xlu0 %21 }
  0x7b   :  { %1807 = vmatprep.subr.msk.bf16.mxu1 %vm1806_vm1, %v1805_v8  ;;  %1654 = vmatprep.mubr.msk.f32.mxu1 %vm29_vm0, %v22_v10 }
  0x7c   :  { %1810 = vmatpush3.bf16.xpose.msk.msra.mxu1 %vm1806_vm1, %v1805_v8 }
  0x7d   :  { %1812 = vmatprep.subr.bf16.mxu1 %v1811_v9 }
  0x83   :  { %1655 = vmatmul.mubr.msk.f32.vlgmr.msra.gmra.mrb[0].mxu1 %vm29_vm0, %v24_v15 }
  0x84   :  { %1814 = vmatpush1.bf16.msra.mxu1 %v1813_v16  ;;  %211 = vmatprep.mubr.f32.mxu1 %v2038_v23 }
  0x85   :  { %1816 = vmatprep.subr.bf16.mxu1 %v1815_v17 }
  0x88   :  { %1818 = vmatpush1.bf16.msra.mxu1 %v1817_v22 }
  0x89   :  { %1820 = vmatprep.subr.bf16.mxu1 %v1819_v24 }
  0x8c   :  { %1822 = vmatpush1.bf16.msra.mxu1 %v1821_v29 }
  0x8d   :  { %1824 = vmatprep.subr.bf16.mxu1 %v1823_v30 }
  0x90   :  { %1826 = vmatpush1.bf16.msra.mxu1 %v1825_v33 }
  0x93   :  { %1532 = vmatmul.mubr.msk.f32.vlgmr.msra.gmra.mrb[2].mxu1 %vm142_vm2, %v2073_v0 }
  0x94   :  { %217 = vmatprep.mubr.f32.mxu1 %v2038_v23 }
  0x97   :  { %1533 = vmatmul.mubr.msk.f32.gmra.mrb[4].mxu1 %vm142_vm2, %v2078_v1 }
 0x156   :  { %v2142_v34 = vpop.f32.mrb[0].mxu1 }
 0x157   :  { %v2144_v35 = vpop.f32.mrb[1].mxu1  ;;  %vm608_vm5 = vcmp.gt.f32.partialorder %v2142_v34, 0.5 }
 0x158   :  { %vm607_vm6 = vcmp.gt.f32.partialorder %v2144_v35, 0.5 }
 0x166   :  { %v213_v43 = vpop.f32.mrb[2].mxu1 }
 0x167   :  { %v214_v44 = vadd.f32 %v213_v43, %v135_v41  ;;  %v215_v45 = vpop.f32.mrb[3].mxu1 }
 0x168   :  { %v216_v46 = vadd.f32 %v215_v45, %v139_v42 }
 0x169   :  { %226 = vrot.lane.b32.xlu1 %v214_v44, %s2039_s28  ;;  %1661 = vmatprep.mubr.msk.f32.mxu0 %vm262_vm3, %v214_v44 }
 0x16a   :  { %v219_v47 = vpop.f32.mrb[4].mxu1 }
 0x16b   :  { %v220_v48 = vadd.f32 %v219_v47, %v135_v41  ;;  %v221_v49 = vpop.f32.mrb[5].mxu1 }
 0x16c   :  { %v222_v50 = vadd.f32 %v221_v49, %v139_v42 }
 0x16d   :  { %228 = vrot.lane.b32.xlu0 %v220_v48, %s2039_s28  ;;  %230 = vrot.lane.b32.xlu1 %v214_v44, %s2040_s1  ;;  %v1961_v53 = vpack.i.bf16 %v220_v48, %v214_v44 }
 0x16e   :  { %v1851_v51 = vpack.c.bf16 %v222_v50, %v216_v46  ;;  %v2161_v52 = vpack.i.bf16 %v222_v50, %v216_v46 }
 0x171   :  { %232 = vrot.lane.b32.xlu0 %v220_v48, %s2040_s1  ;;  %234 = vrot.lane.b32.xlu1 %v214_v44, %s2041_s29 }
 0x175   :  { %236 = vrot.lane.b32.xlu0 %v220_v48, %s2041_s29  ;;  %1962 = vrot.lane.b32.xlu1 %v1961_v53, %s2036_s19 }
 0x1db   :  { %v227_v54 = vpop.permute.xlu1 %226 }
 0x1df   :  { %v229_v55 = vpop.permute.xlu0 %228  ;;  %v231_v56 = vpop.permute.xlu1 %230 }
 0x1e0   :  { %v1966_v57 = vpack.i.bf16 %v229_v55, %v227_v54  ;;  %1675 = vmatprep.mubr.msk.f32.mxu1 %vm262_vm3, %v231_v56 }
 0x1e2   :  { %1967 = vrot.lane.b32.xlu0 %v1966_v57, %s2036_s19 }
 0x1e3   :  { %v233_v58 = vpop.permute.xlu0 %232  ;;  %v235_v59 = vpop.permute.xlu1 %234 }
 0x1e4   :  { %v1971_v60 = vpack.i.bf16 %v233_v58, %v231_v56 }
 0x1e6   :  { %1972 = vrot.lane.b32.xlu1 %v1971_v60, %s2036_s19 }
 0x1e7   :  { %v237_v61 = vpop.permute.xlu0 %236  ;;  %v1963_v62 = vpop.permute.xlu1 %1962 }
 0x1e8   :  { %v1976_v63 = vpack.i.bf16 %v237_v61, %v235_v59  ;;  %v1965_v2 = vunpack.i.h.bf16 %v1963_v62  ;;  %v1964_v3 = vunpack.i.l.bf16 %v1963_v62 }
 0x1ea   :  { %1977 = vrot.lane.b32.xlu0 %v1976_v63, %s2036_s19  ;;  %v1827_v5 = vpack.c.bf16 %v1965_v2, %v1964_v3 }
 0x1ec   :  { %1829 = vmatprep.subr.msk.bf16.mxu0 %vm2172_vm4, %v1827_v5 }
 0x1ed   :  { %1832 = vmatpush3.bf16.xpose.msk.msra.mxu0 %vm2172_vm4, %v1827_v5 }
 0x1f4   :  { %1662 = vmatmul.mubr.msk.f32.vlgmr.msra.gmra.mrb[0].mxu0 %vm262_vm3, %v220_v48 }
 0x1f5   :  { %1668 = vmatprep.mubr.msk.f32.mxu0 %vm262_vm3, %v227_v54 }
 0x254   :  { %v1968_v6 = vpop.permute.xlu0 %1967 }
 0x255   :  { %v1970_v7 = vunpack.i.h.bf16 %v1968_v6  ;;  %v1969_v8 = vunpack.i.l.bf16 %v1968_v6 }
 0x257   :  { %v1833_v9 = vpack.c.bf16 %v1970_v7, %v1969_v8 }
 0x258   :  { %v1973_v10 = vpop.permute.xlu1 %1972 }
 0x259   :  { %v1975_v11 = vunpack.i.h.bf16 %v1973_v10  ;;  %v1974_v12 = vunpack.i.l.bf16 %v1973_v10  ;;  %1835 = vmatprep.subr.msk.bf16.mxu0 %vm2172_vm4, %v1833_v9 }
 0x25a   :  { %1838 = vmatpush3.bf16.xpose.msk.msra.mxu0 %vm2172_vm4, %v1833_v9 }
 0x25b   :  { %v1839_v13 = vpack.c.bf16 %v1975_v11, %v1974_v12 }
 0x25c   :  { %v1978_v14 = vpop.permute.xlu0 %1977 }
 0x25d   :  { %v1980_v15 = vunpack.i.h.bf16 %v1978_v14  ;;  %v1979_v16 = vunpack.i.l.bf16 %v1978_v14  ;;  %1841 = vmatprep.subr.msk.bf16.mxu1 %vm2172_vm4, %v1839_v13 }
 0x25e   :  { %1844 = vmatpush3.bf16.xpose.msk.msra.mxu1 %vm2172_vm4, %v1839_v13 }
 0x25f   :  { %v1845_v17 = vpack.c.bf16 %v1980_v15, %v1979_v16  ;;  %1852 = vmatprep.subr.bf16.mxu1 %v1851_v51 }
 0x261   :  { %1669 = vmatmul.mubr.msk.f32.vlgmr.msra.gmra.mrb[2].mxu0 %vm262_vm3, %v229_v55  ;;  %1847 = vmatprep.subr.msk.bf16.mxu0 %vm2172_vm4, %v1845_v17 }
 0x262   :  { %1850 = vmatpush3.bf16.xpose.msk.msra.mxu0 %vm2172_vm4, %v1845_v17  ;;  %1682 = vmatprep.mubr.msk.f32.mxu0 %vm262_vm3, %v235_v59 }
 0x265   :  { %1676 = vmatmul.mubr.msk.f32.vlgmr.msra.gmra.mrb[6].mxu1 %vm262_vm3, %v233_v58 }
 0x266   :  { %1854 = vmatpush3.bf16.msra.mxu1 %v1851_v51 }
 0x269   :  { %1683 = vmatmul.mubr.msk.f32.vlgmr.msra.gmra.mrb[4].mxu0 %vm262_vm3, %v237_v61 }
 0x2c7   :  { %v1663_v18 = vpop.f32.mrb[0].mxu0 }
 0x2c8   :  { %v610_v19 = vsel %vm608_vm5, %v1663_v18, -1e+09  ;;  %v337_v20 = vpop.f32.mrb[1].mxu0 }
 0x2c9   :  { %v609_v21 = vsel %vm607_vm6, %v337_v20, -1e+09  ;;  %v620_v22 = vsel %vm262_vm3, %v610_v19, -inf }
 0x2ca   :  { %621 = vmax.xlane.f32.xlu0 %v620_v22  ;;  %v617_v23 = vsel %vm262_vm3, %v609_v21, -inf }
 0x2cb   :  { %618 = vmax.xlane.f32.xlu1 %v617_v23 }
 0x334   :  { %v1670_v24 = vpop.f32.mrb[2].mxu0 }
 0x335   :  { %v612_v25 = vsel %vm608_vm5, %v1670_v24, -1e+09  ;;  %v424_v26 = vpop.f32.mrb[3].mxu0 }
 0x336   :  { %v611_v27 = vsel %vm607_vm6, %v424_v26, -1e+09  ;;  %v626_v28 = vsel %vm262_vm3, %v612_v25, -inf }
 0x337   :  { %627 = vmax.xlane.f32.xlu1 %v626_v28  ;;  %v623_v29 = vsel %vm262_vm3, %v611_v27, -inf }
 0x338   :  { %v1677_v30 = vpop.f32.mrb[6].mxu1  ;;  %624 = vmax.xlane.f32.xlu0 %v623_v29 }
 0x339   :  { %v614_v31 = vsel %vm608_vm5, %v1677_v30, -1e+09  ;;  %v511_v32 = vpop.f32.mrb[7].mxu1 }
 0x33a   :  { %v613_v33 = vsel %vm607_vm6, %v511_v32, -1e+09  ;;  %v632_v36 = vsel %vm262_vm3, %v614_v31, -inf }
 0x33b   :  { %633 = vmax.xlane.f32.xlu1 %v632_v36  ;;  %v629_v39 = vsel %vm262_vm3, %v613_v33, -inf }
 0x33c   :  { %630 = vmax.xlane.f32.xlu0 %v629_v39  ;;  %v1684_v41 = vpop.f32.mrb[4].mxu0 }
 0x33d   :  { %v616_v42 = vsel %vm608_vm5, %v1684_v41, -1e+09  ;;  %v598_v43 = vpop.f32.mrb[5].mxu0 }
 0x33e   :  { %v615_v44 = vsel %vm607_vm6, %v598_v43, -1e+09  ;;  %v638_v45 = vsel %vm262_vm3, %v616_v42, -inf }
 0x33f   :  { %639 = vmax.xlane.f32.xlu1 %v638_v45  ;;  %v635_v46 = vsel %vm262_vm3, %v615_v44, -inf }
 0x340   :  { %636 = vmax.xlane.f32.xlu0 %v635_v46 }
 0x357   :  { %v622_v47 = vpop.xlane.xlu0 %621 }
 0x358   :  { %v642_v48 = vsub.f32 %v610_v19, %v622_v47  ;;  %v619_v49 = vpop.xlane.xlu1 %618 }
 0x359   :  { %v641_v50 = vsub.f32 %v609_v21, %v619_v49 }
 0x35a   :  { %v651_v51 = vmul.f32 1.442695, %v642_v48 }
 0x35b   :  { %v649_v53 = vmul.f32 1.442695, %v641_v50 }
 0x35c   :  { %1996 = vpow2.f32 %v651_v51 }
 0x35d   :  { %1998 = vpow2.f32 %v649_v53 }
 0x366   :  { %v1997_v34 = vpop.eup %1996 }
 0x367   :  { %v1999_v54 = vpop.eup %1998  ;;  %v668_v55 = vsel %vm262_vm3, %v1997_v34, 0.0 }
 0x368   :  { %669 = vadd.xlane.f32.xlu1 %v668_v55  ;;  %v665_v35 = vsel %vm262_vm3, %v1999_v54, 0.0 }
 0x369   :  { %666 = vadd.xlane.f32.xlu0 %v665_v35 }
 0x3c4   :  { %v628_v56 = vpop.xlane.xlu1 %627 }
 0x3c5   :  { %v644_v57 = vsub.f32 %v612_v25, %v628_v56  ;;  %v625_v58 = vpop.xlane.xlu0 %624 }
 0x3c6   :  { %v643_v59 = vsub.f32 %v611_v27, %v625_v58 }
 0x3c7   :  { %v655_v60 = vmul.f32 1.442695, %v644_v57 }
 0x3c8   :  { %v653_v61 = vmul.f32 1.442695, %v643_v59  ;;  %v634_v62 = vpop.xlane.xlu1 %633 }
 0x3c9   :  { %2000 = vpow2.f32 %v655_v60  ;;  %v646_v63 = vsub.f32 %v614_v31, %v634_v62  ;;  %v631_v2 = vpop.xlane.xlu0 %630 }
 0x3ca   :  { %2002 = vpow2.f32 %v653_v61  ;;  %v645_v3 = vsub.f32 %v613_v33, %v631_v2  ;;  %v1062_v2 = vld [vmem:[%s2436_s3 + $0x8] sm:$0xff] }
 0x3cb   :  { %v659_v4 = vmul.f32 1.442695, %v646_v63  ;;  %v1061_v63 = vld [vmem:[%s2436_s3] sm:$0xff] }
 0x3cc   :  { %v657_v5 = vmul.f32 1.442695, %v645_v3  ;;  %v640_v6 = vpop.xlane.xlu1 %639  ;;  %v1063_v3 = vld [vmem:[%s2436_s3 + $0x10] sm:$0xff] }
 0x3cd   :  { %2004 = vpow2.f32 %v659_v4  ;;  %v648_v7 = vsub.f32 %v616_v42, %v640_v6  ;;  %v637_v8 = vpop.xlane.xlu0 %636  ;;  %v1867_v4 = vpack.c.bf16 %v1062_v2, %v1061_v63  ;;  %v1178_v63 = vld [vmem:[%s2437_s2 + $0x38] sm:$0xff] }
 0x3ce   :  { %2006 = vpow2.f32 %v657_v5  ;;  %v647_v9 = vsub.f32 %v615_v44, %v637_v8  ;;  %v1064_v5 = vld [vmem:[%s2436_s3 + $0x18] sm:$0xff] }
 0x3cf   :  { %v663_v10 = vmul.f32 1.442695, %v648_v7  ;;  %v1871_v6 = vpack.c.bf16 %v1064_v5, %v1063_v3  ;;  %v1069_v3 = vld [vmem:[%s2436_s3 + $0x40] sm:$0xff]  ;;  %v1071_v5 = vld [vmem:[%s2436_s3 + $0x50] sm:$0xff] }
 0x3d0   :  { %v661_v11 = vmul.f32 1.442695, %v647_v9  ;;  %v1065_v9 = vld [vmem:[%s2436_s3 + $0x20] sm:$0xff] }
 0x3d1   :  { %2008 = vpow2.f32 %v663_v10  ;;  %v1066_v10 = vld [vmem:[%s2436_s3 + $0x28] sm:$0xff] }
 0x3d2   :  { %2010 = vpow2.f32 %v661_v11  ;;  %v1875_v11 = vpack.c.bf16 %v1066_v10, %v1065_v9  ;;  %v1073_v9 = vld [vmem:[%s2436_s3 + $0x60] sm:$0xff]  ;;  %v1074_v10 = vld [vmem:[%s2436_s3 + $0x68] sm:$0xff] }
 0x3d3   :  { %v2227_v12 = vpop.eup %2000 }
 0x3d4   :  { %v2003_v13 = vpop.eup %2002  ;;  %v674_v14 = vsel %vm262_vm3, %v2227_v12, 0.0 }
 0x3d5   :  { %675 = vadd.xlane.f32.xlu1 %v674_v14  ;;  %v671_v15 = vsel %vm262_vm3, %v2003_v13, 0.0 }
 0x3d6   :  { %672 = vadd.xlane.f32.xlu0 %v671_v15 }
 0x3d7   :  { %v2005_v16 = vpop.eup %2004 }
 0x3d8   :  { %v2007_v17 = vpop.eup %2006  ;;  %v680_v18 = vsel %vm262_vm3, %v2005_v16, 0.0 }
 0x3d9   :  { %681 = vadd.xlane.f32.xlu1 %v680_v18  ;;  %v677_v19 = vsel %vm262_vm3, %v2007_v17, 0.0 }
 0x3da   :  { %678 = vadd.xlane.f32.xlu0 %v677_v19 }
 0x3db   :  { %v2234_v20 = vpop.eup %2008 }
 0x3dc   :  { %v2011_v21 = vpop.eup %2010  ;;  %v686_v22 = vsel %vm262_vm3, %v2234_v20, 0.0 }
 0x3dd   :  { %687 = vadd.xlane.f32.xlu1 %v686_v22  ;;  %v683_v23 = vsel %vm262_vm3, %v2011_v21, 0.0 }
 0x3de   :  { %684 = vadd.xlane.f32.xlu0 %v683_v23 }
 0x3ee   :  { %1987 = vrot.lane.b32.xlu1 %v2161_v52, %s2040_s1 }
 0x3f2   :  { %1992 = vrot.lane.b32.xlu1 %v2161_v52, %s2041_s29 }
 0x3f4   :  { %1982 = vrot.lane.b32.xlu0 %v2161_v52, %s2039_s28 }
 0x3f5   :  { %v670_v24 = vpop.xlane.xlu1 %669 }
 0x3f6   :  { %2012 = vrcp.f32 %v670_v24  ;;  %v667_v25 = vpop.xlane.xlu0 %666 }
 0x3f7   :  { %2014 = vrcp.f32 %v667_v25 }
 0x400   :  { %v2013_v26 = vpop.eup %2012 }
 0x401   :  { %v2015_v27 = vpop.eup %2014  ;;  %v698_v29 = vmul.f32 %v2013_v26, %v1997_v34 }
 0x402   :  { %v697_v28 = vmul.f32 %v2015_v27, %v1999_v54 }
 0x404   :  { %1689 = vmatprep.mubr.msk.f32.mxu1 %vm262_vm3, %v697_v28 }
 0x405   :  { %1690 = vmatmul.mubr.msk.f32.vlgmr.msra.gmra.mrb[8].mxu1 %vm262_vm3, %v698_v29 }
 0x462   :  { %v676_v30 = vpop.xlane.xlu1 %675 }
 0x463   :  { %v673_v31 = vpop.xlane.xlu0 %672 }
 0x464   :  { %2016 = vrcp.f32 %v673_v31 }
 0x466   :  { %v682_v32 = vpop.xlane.xlu1 %681 }
 0x467   :  { %2018 = vrcp.f32 %v682_v32  ;;  %v679_v33 = vpop.xlane.xlu0 %678 }
 0x468   :  { %2020 = vrcp.f32 %v679_v33  ;;  %v2286_v33 = vld [vmem:[%s2436_s3 + $0xc0] sm:$0x3f] }
 0x469   :  { %2022 = vrcp.f32 %v676_v30 }
 0x46a   :  { %v688_v52 = vpop.xlane.xlu1 %687 }
 0x46b   :  { %v685_v36 = vpop.xlane.xlu0 %684 }
 0x46c   :  { %2024 = vrcp.f32 %v685_v36 }
 0x46d   :  { %2026 = vrcp.f32 %v688_v52  ;;  %v1089_v52 = vrot.slane %v2286_v33, %v134_v38 }
 0x46e   :  { %v2017_v39 = vpop.eup %2016  ;;  %v1988_v41 = vpop.permute.xlu1 %1987 }
 0x46f   :  { %v1990_v42 = vunpack.i.h.bf16 %v1988_v41  ;;  %v1989_v43 = vunpack.i.l.bf16 %v1988_v41  ;;  %v1983_v44 = vpop.permute.xlu0 %1982  ;;  %v699_v45 = vmul.f32 %v2017_v39, %v2003_v13  ;;  %v1068_v13 = vld [vmem:[%s2436_s3 + $0x38] sm:$0xff] }
 0x470   :  { %v1985_v46 = vunpack.i.h.bf16 %v1983_v44  ;;  %v1984_v47 = vunpack.i.l.bf16 %v1983_v44 }
 0x471   :  { %v2019_v48 = vpop.eup %2018  ;;  %v1859_v49 = vpack.c.bf16 %v1990_v42, %v1989_v43  ;;  %1696 = vmatprep.mubr.msk.f32.mxu1 %vm262_vm3, %v699_v45 }
 0x472   :  { %v2021_v50 = vpop.eup %2020  ;;  %v1855_v51 = vpack.c.bf16 %v1985_v46, %v1984_v47  ;;  %v1993_v53 = vpop.permute.xlu1 %1992  ;;  %v702_v56 = vmul.f32 %v2019_v48, %v2005_v16 }
 0x473   :  { %v2023_v34 = vpop.eup %2022  ;;  %v1995_v54 = vunpack.i.h.bf16 %v1993_v53  ;;  %v1994_v55 = vunpack.i.l.bf16 %v1993_v53  ;;  %1860 = vmatprep.subr.bf16.mxu0 %v1859_v49  ;;  %v701_v35 = vmul.f32 %v2021_v50, %v2007_v17 }
 0x474   :  { %1856 = vmatprep.subr.bf16.mxu1 %v1855_v51  ;;  %1862 = vmatpush3.bf16.msra.mxu0 %v1859_v49  ;;  %v700_v59 = vmul.f32 %v2023_v34, %v2227_v12  ;;  %v1067_v12 = vld [vmem:[%s2436_s3 + $0x30] sm:$0xff] }
 0x475   :  { %v1863_v57 = vpack.c.bf16 %v1995_v54, %v1994_v55  ;;  %1858 = vmatpush3.bf16.msra.mxu1 %v1855_v51  ;;  %1703 = vmatprep.mubr.msk.f32.mxu0 %vm262_vm3, %v701_v35  ;;  %v1879_v14 = vpack.c.bf16 %v1068_v13, %v1067_v12  ;;  %v1171_v54 = vld [vmem:[%s2437_s2] sm:$0xff]  ;;  %v1172_v55 = vld [vmem:[%s2437_s2 + $0x8] sm:$0xff]  ;;  %v1075_v12 = vld [vmem:[%s2436_s3 + $0x70] sm:$0xff] }
 0x476   :  { %v2025_v58 = vpop.eup %2024  ;;  %1868 = vmatprep.subr.bf16.mxu0 %v1867_v4  ;;  %v1883_v35 = vpack.c.bf16 %v1172_v55, %v1171_v54  ;;  %v1076_v13 = vld [vmem:[%s2436_s3 + $0x78] sm:$0xff] }
 0x477   :  { %v2027_v60 = vpop.eup %2026  ;;  %1704 = vmatmul.mubr.msk.f32.vlgmr.msra.gmra.mrb[6].mxu0 %vm262_vm3, %v702_v56  ;;  %1864 = vmatprep.subr.bf16.mxu1 %v1863_v57  ;;  %v703_v61 = vmul.f32 %v2025_v58, %v2011_v21  ;;  %v1173_v56 = vld [vmem:[%s2437_s2 + $0x10] sm:$0xff] }
 0x478   :  { %1697 = vmatmul.mubr.msk.f32.vlgmr.msra.gmra.mrb[10].mxu1 %vm262_vm3, %v700_v59  ;;  %v704_v62 = vmul.f32 %v2027_v60, %v2234_v20  ;;  %1870 = vmatpush3.bf16.msra.mxu0 %v1867_v4  ;;  %v1175_v59 = vld [vmem:[%s2437_s2 + $0x20] sm:$0xff]  ;;  %v1176_v60 = vld [vmem:[%s2437_s2 + $0x28] sm:$0xff] }
 0x479   :  { %1866 = vmatpush3.bf16.msra.mxu1 %v1863_v57  ;;  %1710 = vmatprep.mubr.msk.f32.mxu1 %vm262_vm3, %v703_v61  ;;  %v1174_v57 = vld [vmem:[%s2437_s2 + $0x18] sm:$0xff]  ;;  %v1891_v61 = vpack.c.bf16 %v1176_v60, %v1175_v59  ;;  %v1070_v4 = vld [vmem:[%s2436_s3 + $0x48] sm:$0xff] }
 0x47a   :  { %1872 = vmatprep.subr.bf16.mxu0 %v1871_v6  ;;  %1884 = vmatprep.subr.bf16.mxu1 %v1883_v35  ;;  %v1887_v58 = vpack.c.bf16 %v1174_v57, %v1173_v56 }
 0x47c   :  { %1711 = vmatmul.mubr.msk.f32.vlgmr.msra.gmra.mrb[12].mxu1 %vm262_vm3, %v704_v62  ;;  %1874 = vmatpush3.bf16.msra.mxu0 %v1871_v6  ;;  %v1177_v62 = vld [vmem:[%s2437_s2 + $0x30] sm:$0xff]  ;;  %v1899_v6 = vpack.c.bf16 %v1070_v4, %v1069_v3 }
 0x47d   :  { %1876 = vmatprep.subr.bf16.mxu0 %v1875_v11  ;;  %1886 = vmatpush3.bf16.msra.mxu1 %v1883_v35  ;;  %v1895_v2 = vpack.c.bf16 %v1178_v63, %v1177_v62 }
 0x47e   :  { %1888 = vmatprep.subr.bf16.mxu1 %v1887_v58 }
 0x480   :  { %1878 = vmatpush3.bf16.msra.mxu0 %v1875_v11  ;;  %v1907_v11 = vpack.c.bf16 %v1074_v10, %v1073_v9  ;;  %v1179_v9 = vld [vmem:[%s2437_s2 + $0x40] sm:$0xff]  ;;  %v1180_v10 = vld [vmem:[%s2437_s2 + $0x48] sm:$0xff] }
 0x481   :  { %1880 = vmatprep.subr.bf16.mxu0 %v1879_v14  ;;  %1890 = vmatpush3.bf16.msra.mxu1 %v1887_v58 }
 0x482   :  { %1892 = vmatprep.subr.bf16.mxu1 %v1891_v61 }
 0x484   :  { %1882 = vmatpush3.bf16.msra.mxu0 %v1879_v14  ;;  %v1911_v14 = vpack.c.bf16 %v1076_v13, %v1075_v12  ;;  %v1181_v12 = vld [vmem:[%s2437_s2 + $0x50] sm:$0xff]  ;;  %v1182_v13 = vld [vmem:[%s2437_s2 + $0x58] sm:$0xff] }
 0x485   :  { %1894 = vmatpush3.bf16.msra.mxu1 %v1891_v61  ;;  %1900 = vmatprep.subr.bf16.mxu0 %v1899_v6 }
 0x486   :  { %1896 = vmatprep.subr.bf16.mxu1 %v1895_v2 }
 0x489   :  { %1898 = vmatpush3.bf16.msra.mxu1 %v1895_v2 }
 0x4d8   :  { %v1691_v7 = vpop.f32.mrb[8].mxu1 }
 0x4d9   :  { %v777_v8 = vpop.f32.mrb[9].mxu1 }
 0x54a   :  { %v1705_v15 = vpop.f32.mrb[6].mxu0 }
 0x54b   :  { %v1698_v16 = vpop.f32.mrb[10].mxu1  ;;  %v939_v17 = vpop.f32.mrb[7].mxu0 }
 0x54c   :  { %1033 = vrot.lane.b32.xlu1 %v1698_v16, %s2042_s20  ;;  %v858_v18 = vpop.f32.mrb[11].mxu1  ;;  %v1078_v16 = vld [vmem:[%s2436_s3 + $0x88] sm:$0xff] }
 0x54d   :  { %1031 = vrot.lane.b32.xlu0 %v858_v18, %s2042_s20  ;;  %v1079_v18 = vld [vmem:[%s2436_s3 + $0x90] sm:$0xff] }
 0x54f   :  { %v1712_v19 = vpop.f32.mrb[12].mxu1 }
 0x550   :  { %1041 = vrot.lane.b32.xlu1 %v1705_v15, %s2043_s21  ;;  %v1020_v20 = vpop.f32.mrb[13].mxu1  ;;  %v1077_v15 = vld [vmem:[%s2436_s3 + $0x80] sm:$0xff] }
 0x551   :  { %1039 = vrot.lane.b32.xlu0 %v939_v17, %s2043_s21  ;;  %v1915_v17 = vpack.c.bf16 %v1078_v16, %v1077_v15  ;;  %v1183_v15 = vld [vmem:[%s2437_s2 + $0x60] sm:$0xff]  ;;  %v1184_v16 = vld [vmem:[%s2437_s2 + $0x68] sm:$0xff] }
 0x554   :  { %1049 = vrot.lane.b32.xlu1 %v1712_v19, %s2044_s22  ;;  %v1080_v19 = vld [vmem:[%s2436_s3 + $0x98] sm:$0xff] }
 0x555   :  { %1047 = vrot.lane.b32.xlu0 %v1020_v20, %s2044_s22  ;;  %v1919_v20 = vpack.c.bf16 %v1080_v19, %v1079_v18  ;;  %v1185_v18 = vld [vmem:[%s2437_s2 + $0x70] sm:$0xff]  ;;  %v1186_v19 = vld [vmem:[%s2437_s2 + $0x78] sm:$0xff] }
 0x5be   :  { %v1034_v21 = vpop.permute.xlu1 %1033 }
 0x5bf   :  { %v1032_v22 = vpop.permute.xlu0 %1031  ;;  %v1054_v27 = vsel %vm262_vm3, %v1691_v7, %v1034_v21  ;;  %v1072_v7 = vld [vmem:[%s2436_s3 + $0x58] sm:$0xff]  ;;  %v1081_v21 = vld [vmem:[%s2436_s3 + $0xa0] sm:$0xff] }
 0x5c0   :  { %v1053_v25 = vsel %vm262_vm3, %v777_v8, %v1032_v22  ;;  %v1903_v8 = vpack.c.bf16 %v1072_v7, %v1071_v5  ;;  %v1082_v22 = vld [vmem:[%s2436_s3 + $0xa8] sm:$0xff] }
 0x5c2   :  { %v1042_v23 = vpop.permute.xlu1 %1041 }
 0x5c3   :  { %v1040_v24 = vpop.permute.xlu0 %1039  ;;  %v1057_v30 = vsel %vm1055_vm7, %v1054_v27, %v1042_v23  ;;  %v1923_v23 = vpack.c.bf16 %v1082_v22, %v1081_v21 }
 0x5c4   :  { %v1056_v28 = vsel %vm1055_vm7, %v1053_v25, %v1040_v24 }
 0x5c6   :  { %v1050_v26 = vpop.permute.xlu1 %1049 }
 0x5c7   :  { %v1048_v29 = vpop.permute.xlu0 %1047  ;;  %v1060_v32 = vsel %vm1058_vm8, %v1057_v30, %v1050_v26  ;;  %v1226_v30 = vsub.s32 2, %v2146_v37 }
 0x5c8   :  { %v1059_v31 = vsel %vm1058_vm8, %v1056_v28, %v1048_v29 }
 0x5c9   :  { %1729 = vmatprep.mubr.msk.f32.mxu0 %vm142_vm2, %v1059_v31  ;;  %v1221_v31 = vrot.slane %v2286_v33, %v138_v40  ;;  %v1083_v40 = vld [vmem:[%s2436_s3 + $0xb0] sm:$0xff] }
 0x5ca   :  { %1730 = vmatmul.mubr.msk.f32.vlgmr.msra.gmra.mrb[8].mxu0 %vm142_vm2, %v1060_v32 }
 0x5cb   :  { %1902 = vmatpush3.bf16.msra.mxu0 %v1899_v6 }
 0x5cc   :  { %1904 = vmatprep.subr.bf16.mxu0 %v1903_v8 }
 0x5cf   :  { %1906 = vmatpush3.bf16.msra.mxu0 %v1903_v8 }
 0x5d0   :  { %1908 = vmatprep.subr.bf16.mxu0 %v1907_v11 }
 0x5d3   :  { %1910 = vmatpush3.bf16.msra.mxu0 %v1907_v11  ;;  %v1931_v11 = vpack.c.bf16 %v1180_v10, %v1179_v9 }
 0x5d4   :  { %1912 = vmatprep.subr.bf16.mxu0 %v1911_v14 }
 0x5d5   :  { %1932 = vmatprep.subr.bf16.mxu1 %v1931_v11 }
 0x5d7   :  { %1914 = vmatpush3.bf16.msra.mxu0 %v1911_v14  ;;  %v1935_v14 = vpack.c.bf16 %v1182_v13, %v1181_v12 }
 0x5d8   :  { %1916 = vmatprep.subr.bf16.mxu0 %v1915_v17 }
 0x5db   :  { %1918 = vmatpush3.bf16.msra.mxu0 %v1915_v17  ;;  %v1939_v17 = vpack.c.bf16 %v1184_v16, %v1183_v15 }
 0x5dc   :  { %1920 = vmatprep.subr.bf16.mxu0 %v1919_v20 }
 0x5df   :  { %1922 = vmatpush3.bf16.msra.mxu0 %v1919_v20  ;;  %v1943_v20 = vpack.c.bf16 %v1186_v19, %v1185_v18 }
 0x5e0   :  { %1924 = vmatprep.subr.bf16.mxu0 %v1923_v23 }
 0x5e3   :  { %1926 = vmatpush3.bf16.msra.mxu0 %v1923_v23 }
 0x69d   :  { %v1731_v36 = vpop.f32.mrb[8].mxu0 }
 0x69e   :  { %v1168_v39 = vadd.f32 %v1731_v36, %v1089_v52  ;;  %v1162_v41 = vpop.f32.mrb[9].mxu0  ;;  %v1227_v36 = vrot.slane %v2286_v33, %v1226_v30 }
 0x69f   :  { %v1163_v42 = vadd.f32 %v1162_v41, %v1089_v52 }
 0x6a0   :  { %v1190_v43 = vadd.f32 %v1168_v39, %v2078_v1 }
 0x6a1   :  { %v1189_v44 = vadd.f32 %v1163_v42, %v2073_v0 }
 0x6a2   :  { %v1194_v45 = vsel %vm142_vm2, %v1190_v43, 0.0 }
 0x6a3   :  { %1195 = vadd.xlane.f32.xlu1 %v1194_v45  ;;  %v1191_v46 = vsel %vm142_vm2, %v1189_v44, 0.0 }
 0x6a4   :  { %1192 = vadd.xlane.f32.xlu0 %v1191_v46  ;;  %v1084_v46 = vld [vmem:[%s2436_s3 + $0xb8] sm:$0xff] }
 0x730   :  { %v1196_v47 = vpop.xlane.xlu1 %1195 }
 0x731   :  { %v1199_v48 = vmul.f32 0.015625, %v1196_v47  ;;  %v1193_v49 = vpop.xlane.xlu0 %1192  ;;  %v1927_v47 = vpack.c.bf16 %v1084_v46, %v1083_v40 }
 0x732   :  { %v1198_v50 = vmul.f32 0.015625, %v1193_v49 }
 0x733   :  { %v2295_v51 = vsub.f32 %v1190_v43, %v1199_v48  ;;  %1928 = vmatprep.subr.bf16.mxu0 %v1927_v47  ;;  %v1560_v48 = vld [vmem:[%s2437_s2 + $0x80] ss:$0 sm:$0xff] }
 0x734   :  { %v2297_v38 = vsub.f32 %v1189_v44, %v1198_v50  ;;  %1930 = vmatpush3.bf16.msra.mxu0 %v1927_v47 }
 0x735   :  { %v1203_v0 = vmul.f32 %v2295_v51, %v2295_v51 }
 0x736   :  { %v1202_v53 = vmul.f32 %v2297_v38, %v2297_v38 }
 0x737   :  { %v1207_v34 = vsel %vm142_vm2, %v1203_v0, 0.0  ;;  %v1319_v0 = vsub.s32 3, %v2146_v37 }
 0x738   :  { %v1204_v1 = vsel %vm142_vm2, %v1202_v53, 0.0 }
 0x739   :  { %1205 = vadd.xlane.f32.xlu0 %v1204_v1 }
 0x73d   :  { %1208 = vadd.xlane.f32.xlu0 %v1207_v34  ;;  %v1320_v34 = vrot.slane %v2286_v33, %v1319_v0 }
 0x7c6   :  { %v1206_v24 = vpop.xlane.xlu0 %1205 }
 0x7c7   :  { %v1210_v25 = vmul.f32 0.015625, %v1206_v24 }
 0x7c9   :  { %v1212_v26 = vadd.f32 1e-05, %v1210_v25 }
 0x7ca   :  { %v1209_v27 = vpop.xlane.xlu0 %1208 }
 0x7cb   :  { %2028 = vrsqrt.f32 %v1212_v26  ;;  %v1211_v28 = vmul.f32 0.015625, %v1209_v27  ;;  %v1426_v27 = vsub.s32 4, %v2146_v37 }
 0x7cd   :  { %v1213_v29 = vadd.f32 1e-05, %v1211_v28  ;;  %v1432_v28 = vsub.s32 5, %v2146_v37  ;;  %v1563_v37 = vld [vmem:[%s2437_s2 + $0x81] ss:$0 sm:$0xff] }
 0x7cf   :  { %2030 = vrsqrt.f32 %v1213_v29  ;;  %v1427_v29 = vrot.slane %v2286_v33, %v1426_v27 }
 0x7d5   :  { %v2029_v32 = vpop.eup %2028 }
 0x7d6   :  { %v1216_v52 = vmul.f32 %v2029_v32, %v2297_v38 }
 0x7d8   :  { %v1222_v39 = vmul.f32 %v1221_v31, %v1216_v52 }
 0x7d9   :  { %v2031_v41 = vpop.eup %2030 }
 0x7da   :  { %v1217_v42 = vmul.f32 %v2031_v41, %v2295_v51  ;;  %v1228_v43 = vadd.f32 %v1227_v36, %v1222_v39 }
 0x7dc   :  { %v1223_v44 = vmul.f32 %v1221_v31, %v1217_v42  ;;  %1748 = vmatprep.mubr.msk.f32.mxu1 %vm142_vm2, %v1228_v43 }
 0x7de   :  { %v1229_v45 = vadd.f32 %v1227_v36, %v1223_v44  ;;  %v1433_v36 = vrot.slane %v2286_v33, %v1432_v28 }
 0x7e0   :  { %1749 = vmatmul.mubr.msk.f32.vlgmr.msra.gmra.mrb[14].mxu1 %vm142_vm2, %v1229_v45 }
 0x7e1   :  { %1934 = vmatpush3.bf16.msra.mxu1 %v1931_v11 }
 0x7e2   :  { %1936 = vmatprep.subr.bf16.mxu1 %v1935_v14 }
 0x7e5   :  { %1938 = vmatpush3.bf16.msra.mxu1 %v1935_v14 }
 0x7e6   :  { %1940 = vmatprep.subr.bf16.mxu1 %v1939_v17 }
 0x7e9   :  { %1942 = vmatpush3.bf16.msra.mxu1 %v1939_v17 }
 0x7ea   :  { %1944 = vmatprep.subr.bf16.mxu1 %v1943_v20 }
 0x7ed   :  { %1946 = vmatpush3.bf16.msra.mxu1 %v1943_v20 }
 0x8b3   :  { %v1750_v49 = vpop.f32.mrb[14].mxu1 }
 0x8b4   :  { %v1312_v50 = vadd.f32 %v1750_v49, %v1560_v48  ;;  %v1306_v51 = vpop.f32.mrb[15].mxu1 }
 0x8b5   :  { %v1307_v38 = vadd.f32 %v1560_v48, %v1306_v51 }
 0x8b6   :  { %v1316_v1 = vmax.f32 %v1312_v50, 0.0 }
 0x8b7   :  { %v1315_v53 = vmax.f32 %v1307_v38, 0.0 }
 0x8b9   :  { %1783 = vmatprep.mubr.f32.mxu0 %v1315_v53 }
 0x8ba   :  { %1784 = vmatmul.mubr.f32.vlgmr.msra.gmra.mrb[10].mxu0 %v1316_v1 }
 0x98d   :  { %v1785_v54 = vpop.f32.mrb[10].mxu0 }
 0x98e   :  { %v1393_v55 = vadd.f32 %v1785_v54, %v1320_v34  ;;  %v1387_v35 = vpop.f32.mrb[11].mxu0 }
 0x98f   :  { %v1388_v56 = vadd.f32 %v1387_v35, %v1320_v34 }
 0x990   :  { %v1397_v57 = vadd.f32 %v1393_v55, %v1229_v45 }
 0x991   :  { %v1396_v58 = vadd.f32 %v1388_v56, %v1228_v43 }
 0x992   :  { %v1401_v59 = vsel %vm142_vm2, %v1397_v57, 0.0 }
 0x993   :  { %1402 = vadd.xlane.f32.xlu0 %v1401_v59  ;;  %v1398_v60 = vsel %vm142_vm2, %v1396_v58, 0.0 }
 0x994   :  { %1399 = vadd.xlane.f32.xlu1 %v1398_v60 }
 0xa20   :  { %v1403_v61 = vpop.xlane.xlu0 %1402 }
 0xa21   :  { %v1405_v62 = vmul.f32 0.015625, %v1403_v61  ;;  %v1400_v63 = vpop.xlane.xlu1 %1399 }
 0xa22   :  { %v1404_v2 = vmul.f32 0.015625, %v1400_v63 }
 0xa23   :  { %v1407_v3 = vsub.f32 %v1397_v57, %v1405_v62 }
 0xa24   :  { %v1406_v4 = vsub.f32 %v1396_v58, %v1404_v2 }
 0xa25   :  { %v1409_v5 = vmul.f32 %v1407_v3, %v1407_v3 }
 0xa26   :  { %v1408_v6 = vmul.f32 %v1406_v4, %v1406_v4 }
 0xa27   :  { %v1413_v7 = vsel %vm142_vm2, %v1409_v5, 0.0 }
 0xa28   :  { %1414 = vadd.xlane.f32.xlu0 %v1413_v7  ;;  %v1410_v8 = vsel %vm142_vm2, %v1408_v6, 0.0 }
 0xa29   :  { %1411 = vadd.xlane.f32.xlu1 %v1410_v8 }
 0xab5   :  { %v1415_v21 = vpop.xlane.xlu0 %1414 }
 0xab6   :  { %v1417_v22 = vmul.f32 0.015625, %v1415_v21  ;;  %v1412_v23 = vpop.xlane.xlu1 %1411 }
 0xab7   :  { %v1416_v24 = vmul.f32 0.015625, %v1412_v23 }
 0xab8   :  { %v1419_v25 = vadd.f32 1e-05, %v1417_v22 }
 0xab9   :  { %v1418_v26 = vadd.f32 1e-05, %v1416_v24 }
 0xaba   :  { %2032 = vrsqrt.f32 %v1419_v25 }
 0xabb   :  { %2034 = vrsqrt.f32 %v1418_v26 }
 0xac4   :  { %v2033_v30 = vpop.eup %2032 }
 0xac5   :  { %v2035_v31 = vpop.eup %2034  ;;  %v1423_v32 = vmul.f32 %v2033_v30, %v1407_v3 }
 0xac6   :  { %v1422_v52 = vmul.f32 %v2035_v31, %v1406_v4 }
 0xac7   :  { %v1429_v39 = vmul.f32 %v1427_v29, %v1423_v32 }
 0xac8   :  { %v1428_v41 = vmul.f32 %v1427_v29, %v1422_v52 }
 0xac9   :  { %v1435_v43 = vadd.f32 %v1433_v36, %v1429_v39 }
 0xaca   :  { %v1434_v42 = vadd.f32 %v1433_v36, %v1428_v41 }
 0xacc   :  { %1802 = vmatprep.mubr.msk.f32.mxu1 %vm142_vm2, %v1434_v42 }
 0xacd   :  { %1803 = vmatmul.mubr.msk.f32.vlgmr.msra.gmra.mrb[16].mxu1 %vm142_vm2, %v1435_v43 }
 0xba0   :  { %v1804_v44 = vpop.f32.mrb[16].mxu1 }
 0xba1   :  { %v1518_v45 = vadd.f32 %v1804_v44, %v1563_v37  ;;  %v1512_v40 = vpop.f32.mrb[17].mxu1 }
 0xba2   :  { %v1513_v46 = vadd.f32 %v1563_v37, %v1512_v40 }
 0xba3   :  { %1522 = vst [vmem:[%s2438_s4 + $0x8] sm:$0xff] %v1518_v45 }
 0xba4   :  { %1521 = vst [vmem:[%s2438_s4] sm:$0xff] %v1513_v46 }

</bundles_post_ra>
